<compile_context>
chip_gen: v7x
topology: tpu7x:2x2x1
jax: 0.10.0
libtpu: 0.0.40
codegen_flags: <defaults>
</compile_context>

<pallas_src>
import jax
import jax.numpy as jnp
from jax.experimental import pallas as pl
from jax.experimental.pallas import tpu as pltpu

NEG_INF = -1e10        # same masking constant as the PyTorch module
LN_EPS = 1e-5          # torch.nn.LayerNorm default eps
MAX_DEP_VPU = 32       # dep_fc computed as VPU FMAs when num_agents*action_shape <= this

# Row indices inside the packed small-vector parameter slab.
(V_LN0G, V_LN0B, V_B1, V_LN1G, V_LN1B, V_BGRU,
 V_LNRG, V_LNRB, V_BDF, V_LNDG, V_LNDB, V_BHEAD) = range(12)
V_WDF0 = 12            # dep_fc weight rows start here


def _round_up(x, m):
    return (x + m - 1) // m * m


def _layernorm(x, g, b, eps=LN_EPS):
    mu = jnp.mean(x, axis=-1, keepdims=True)
    var = jnp.mean((x - mu) ** 2, axis=-1, keepdims=True)
    return (x - mu) * jax.lax.rsqrt(var + eps) * g + b


def _make_kernel(layout):
    obs_d, H, A, dep_in = layout['obs_d'], layout['H'], layout['A'], layout['dep_in']
    GCOLS, HEAD_OFF, W1_OFF = layout['GCOLS'], layout['HEAD_OFF'], layout['W1_OFF']

    # Static column offsets inside the packed input slab.
    OBS_OFF = 0
    H0_OFF = obs_d
    MSK_OFF = obs_d + H
    PA_OFF = MSK_OFF + 1
    EX_OFF = PA_OFF + dep_in
    AV_OFF = EX_OFF + dep_in

    def kernel(in_ref, vecs_ref, wbig_ref, out_ref):
        inp = in_ref[...]                                   # one dense (bb, IW) load
        obs = inp[:, OBS_OFF:OBS_OFF + obs_d]
        h0 = inp[:, H0_OFF:H0_OFF + H]
        msk = inp[:, MSK_OFF:MSK_OFF + 1]
        pa = inp[:, PA_OFF:PA_OFF + dep_in]
        ex = inp[:, EX_OFF:EX_OFF + dep_in]
        avail = inp[:, AV_OFF:AV_OFF + A]

        # ---- MLPBase: LayerNorm(obs) -> Linear -> ReLU -> LayerNorm -------------------------
        x = _layernorm(obs,
                       vecs_ref[V_LN0G:V_LN0G + 1, :obs_d],
                       vecs_ref[V_LN0B:V_LN0B + 1, :obs_d])
        x = jnp.dot(x, wbig_ref[0:obs_d, W1_OFF:W1_OFF + H],
                    preferred_element_type=jnp.float32) + vecs_ref[V_B1:V_B1 + 1, :H]
        x = jnp.maximum(x, 0.0)
        x = _layernorm(x, vecs_ref[V_LN1G:V_LN1G + 1, :H], vecs_ref[V_LN1B:V_LN1B + 1, :H])

        # ---- RNNLayer: single-step GRU cell (masked hidden), two accumulating dots ----------
        h = h0 * msk
        g = (jnp.dot(x, wbig_ref[0:H, 0:GCOLS], preferred_element_type=jnp.float32)
             + jnp.dot(h, wbig_ref[H:2 * H, 0:GCOLS], preferred_element_type=jnp.float32)
             + vecs_ref[V_BGRU:V_BGRU + 1, 0:GCOLS])
        r = jax.nn.sigmoid(g[:, 0:H])                       # W_ir x + W_hr h + (b_ir + b_hr)
        z = jax.nn.sigmoid(g[:, H:2 * H])                   # W_iz x + W_hz h + (b_iz + b_hz)
        n = jnp.tanh(g[:, 2 * H:3 * H]                      # (W_in x + b_in)
                     + r * g[:, 3 * H:4 * H])               # + r * (W_hn h + b_hn)
        h_new = (1.0 - z) * n + z * h
        feat = _layernorm(h_new, vecs_ref[V_LNRG:V_LNRG + 1, :H],
                          vecs_ref[V_LNRB:V_LNRB + 1, :H])

        # ---- dep_fc((parents_actions * execution_mask).flatten()) on the VPU ----------------
        # K = dep_in is tiny (3 here); a matmul would be 3/128-utilised on the MXU.
        dep_x = pa * ex
        d = vecs_ref[V_BDF:V_BDF + 1, :H]
        for k in range(dep_in):
            d = d + dep_x[:, k:k + 1] * vecs_ref[V_WDF0 + k:V_WDF0 + k + 1, :H]
        d = jnp.maximum(d, 0.0)
        d = _layernorm(d, vecs_ref[V_LNDG:V_LNDG + 1, :H], vecs_ref[V_LNDB:V_LNDB + 1, :H])

        # ---- Combined Categorical heads (act + dep_act) --------------------------------------
        # Per-head `logits - logsumexp(masked logits)` normalizations are row constants that
        # cancel in the final mode / log-prob, so la + ld is computed directly and masked once
        # (identical final result to the PyTorch module).
        xl = (jnp.dot(feat, wbig_ref[0:H, HEAD_OFF:HEAD_OFF + A],
                      preferred_element_type=jnp.float32)
              + jnp.dot(d, wbig_ref[H:2 * H, HEAD_OFF:HEAD_OFF + A],
                        preferred_element_type=jnp.float32)
              + vecs_ref[V_BHEAD:V_BHEAD + 1, :A])
        xl = jnp.where(avail == 0.0, NEG_INF, xl)

        # ---- mode (first argmax) + its log-prob ----------------------------------------------
        m = jnp.max(xl, axis=-1, keepdims=True)
        idx = jax.lax.broadcasted_iota(jnp.int32, xl.shape, 1)
        action = jnp.min(jnp.where(xl == m, idx, A), axis=-1, keepdims=True)   # (bb,1) int32
        lse = m + jnp.log(jnp.sum(jnp.exp(xl - m), axis=-1, keepdims=True))
        logp = jnp.sum(jnp.where(idx == action, xl - lse, 0.0), axis=-1, keepdims=True)

        # ---- single full-width output store ---------------------------------------------------
        pad = jnp.zeros((h_new.shape[0], out_ref.shape[-1] - H - 2), jnp.float32)
        out_ref[...] = jnp.concatenate(
            [h_new, action.astype(jnp.float32), logp, pad], axis=-1)

    return kernel


def r_actor_forward(obs, rnn_states, masks, parents_actions, execution_mask,
                    available_actions, packed_params, *, block_b=1024):
    """Fused forward pass of R_Actor (dep_mode=True, deterministic=True)."""
    vecs, w_big, layout = packed_params
    B = obs.shape[0]
    obs_d, H, A, dep_in = layout['obs_d'], layout['H'], layout['A'], layout['dep_in']
    n_agents, a_shape = parents_actions.shape[1], parents_actions.shape[2]
    assert n_agents * a_shape == dep_in
    assert A < (1 << 24)          # action index is round-tripped through float32

    h0 = rnn_states[:, 0, :]
    pa_flat = parents_actions.reshape(B, dep_in)
    ex_flat = execution_mask if a_shape == 1 else jnp.repeat(execution_mask, a_shape, axis=-1)

    # ---- one lane-dense activation slab per row -------------------------------------------------
    used = obs_d + H + 1 + 2 * dep_in + A
    IW = _round_up(used, 128)
    OW = _round_up(H + 2, 128)
    in_slab = jnp.concatenate(
        [obs, h0, masks, pa_flat, ex_flat, available_actions], axis=-1).astype(jnp.float32)
    if IW > used:
        in_slab = jnp.pad(in_slab, ((0, 0), (0, IW - used)))

    # ---- batch tiling: big tiles (amortise per-step overhead) but >=2 blocks when possible ------
    bb = min(block_b, _round_up(B, 8))
    if _round_up(B, bb) // bb < 2 and B > 8:
        bb = _round_up((B + 1) // 2, 8)        # let both v7x TensorCores get a block
    Bp = _round_up(B, bb)
    if Bp > B:
        in_slab = jnp.pad(in_slab, ((0, Bp - B), (0, 0)))
    nb = Bp // bb

    grid_spec = pltpu.PrefetchScalarGridSpec(
        num_scalar_prefetch=0,
        grid=(nb,),
        in_specs=[pl.BlockSpec((bb, IW), lambda i: (i, 0)),
                  pl.BlockSpec(vecs.shape, lambda i: (0, 0)),
                  pl.BlockSpec(w_big.shape, lambda i: (0, 0))],
        out_specs=pl.BlockSpec((bb, OW), lambda i: (i, 0)),
    )

    slab = pl.pallas_call(
        _make_kernel(layout),
        out_shape=jax.ShapeDtypeStruct((Bp, OW), jnp.float32),
        grid_spec=grid_spec,
        compiler_params=pltpu.CompilerParams(dimension_semantics=("parallel",)),
    )(in_slab, vecs, w_big)

    actions = slab[:B, H:H + 1].astype(jnp.int32)
    action_log_probs = slab[:B, H + 1:H + 2]
    rnn_states_out = slab[:B, :H][:, None, :]
    return actions, action_log_probs, rnn_states_out


def make_params(key, obs_dim, hidden, action_dim, num_agents, action_shape):
    """Deterministic synthetic parameters in natural (PyTorch-like, transposed) layout."""
    ks = jax.random.split(key, 20)
    H = hidden
    dep_in = num_agents * action_shape

    def lin(k, fi, fo, s=0.1):
        return jax.random.normal(k, (fi, fo), jnp.float32) * s

    def vec(k, d, s=0.05, base=0.0):
        return base + jax.random.normal(k, (1, d), jnp.float32) * s

    return dict(
        ln0_g=vec(ks[0], obs_dim, base=1.0), ln0_b=vec(ks[1], obs_dim),
        w1=lin(ks[2], obs_dim, H), b1=vec(ks[3], H),
        ln1_g=vec(ks[4], H, base=1.0), ln1_b=vec(ks[5], H),
        # GRU, gate order r,z,n like torch.nn.GRU; weights stored (in, 3H)
        w_ih=lin(ks[6], H, 3 * H), b_ih=vec(ks[7], 3 * H),
        w_hh=lin(ks[8], H, 3 * H), b_hh=vec(ks[9], 3 * H),
        lnr_g=vec(ks[10], H, base=1.0), lnr_b=vec(ks[11], H),
        w_df=lin(ks[12], dep_in, H), b_df=vec(ks[13], H),
        lnd_g=vec(ks[14], H, base=1.0), lnd_b=vec(ks[15], H),
        w_act=lin(ks[16], H, action_dim), b_act=vec(ks[17], action_dim),
        w_dep=lin(ks[18], 2 * H, action_dim), b_dep=vec(ks[19], action_dim),
    )


def pack_params(p):
    """Build the fused / packed parameter layout consumed by the kernel (off the hot path)."""
    obs_d, H = p['w1'].shape
    A = p['w_act'].shape[1]
    dep_in = p['w_df'].shape[0]
    assert dep_in <= MAX_DEP_VPU  # TODO(synk): matmul fallback for very wide dep_fc inputs

    GCOLS = _round_up(4 * H, 128)             # GRU gate block (gates packed contiguously)
    HEAD_OFF = GCOLS                          # fused act+dep head columns
    W1_OFF = GCOLS + _round_up(A, 128)        # base Linear columns (128-aligned)
    WW = W1_OFF + _round_up(H, 128)
    VW = _round_up(max(GCOLS, obs_d, H, A, 128), 128)
    NV = _round_up(V_WDF0 + dep_in, 8)

    # ---- small-vector slab (LN params, biases, dep_fc weight rows) -----------------------------
    vecs = jnp.zeros((NV, VW), jnp.float32)

    def setrow(v, i, a):
        return v.at[i:i + 1, :a.shape[-1]].set(a)

    vecs = setrow(vecs, V_LN0G, p['ln0_g']); vecs = setrow(vecs, V_LN0B, p['ln0_b'])
    vecs = setrow(vecs, V_B1, p['b1'])
    vecs = setrow(vecs, V_LN1G, p['ln1_g']); vecs = setrow(vecs, V_LN1B, p['ln1_b'])
    # GRU bias: r/z biases pre-summed; n input / hidden biases kept separate (torch semantics).
    b_gru = jnp.concatenate([
        p['b_ih'][:, 0:H] + p['b_hh'][:, 0:H],
        p['b_ih'][:, H:2 * H] + p['b_hh'][:, H:2 * H],
        p['b_ih'][:, 2 * H:3 * H],
        p['b_hh'][:, 2 * H:3 * H]], axis=-1)
    vecs = setrow(vecs, V_BGRU, b_gru)
    vecs = setrow(vecs, V_LNRG, p['lnr_g']); vecs = setrow(vecs, V_LNRB, p['lnr_b'])
    vecs = setrow(vecs, V_BDF, p['b_df'])
    vecs = setrow(vecs, V_LNDG, p['lnd_g']); vecs = setrow(vecs, V_LNDB, p['lnd_b'])
    vecs = setrow(vecs, V_BHEAD, p['b_act'] + p['b_dep'])
    for k in range(dep_in):
        vecs = setrow(vecs, V_WDF0 + k, p['w_df'][k:k + 1, :])

    # ---- single fused weight slab: [ GRU | head | base Linear ] --------------------------------
    # Rows [0:H] multiply x / feat / obs; rows [H:2H] multiply h / dep_fc output.
    w_big = jnp.zeros((2 * H, WW), jnp.float32)
    # GRU columns: r | z | n_x | n_h packed back-to-back (stride H).
    w_big = w_big.at[0:H, 0:H].set(p['w_ih'][:, 0:H])
    w_big = w_big.at[H:2 * H, 0:H].set(p['w_hh'][:, 0:H])
    w_big = w_big.at[0:H, H:2 * H].set(p['w_ih'][:, H:2 * H])
    w_big = w_big.at[H:2 * H, H:2 * H].set(p['w_hh'][:, H:2 * H])
    w_big = w_big.at[0:H, 2 * H:3 * H].set(p['w_ih'][:, 2 * H:3 * H])
    w_big = w_big.at[H:2 * H, 3 * H:4 * H].set(p['w_hh'][:, 2 * H:3 * H])
    # Fused head: la + ld = feat @ (W_act + W_dep_top) + d @ W_dep_bot + (b_act + b_dep).
    w_big = w_big.at[0:H, HEAD_OFF:HEAD_OFF + A].set(p['w_act'] + p['w_dep'][0:H, :])
    w_big = w_big.at[H:2 * H, HEAD_OFF:HEAD_OFF + A].set(p['w_dep'][H:2 * H, :])
    # MLPBase Linear.
    w_big = w_big.at[0:obs_d, W1_OFF:W1_OFF + H].set(p['w1'])

    layout = dict(obs_d=obs_d, H=H, A=A, dep_in=dep_in,
                  GCOLS=GCOLS, HEAD_OFF=HEAD_OFF, W1_OFF=W1_OFF)
    return vecs, w_big, layout


def r_actor_reference(p, obs, rnn_states, masks, parents_actions, execution_mask,
                      available_actions):
    """Pure-JAX mirror of the PyTorch forward (per-head normalization, as in the module)."""
    def ln(x, g, b):
        mu = x.mean(-1, keepdims=True)
        var = ((x - mu) ** 2).mean(-1, keepdims=True)
        return (x - mu) * jax.lax.rsqrt(var + LN_EPS) * g + b

    H = p['b1'].shape[-1]
    B = obs.shape[0]
    x = ln(obs, p['ln0_g'], p['ln0_b'])
    x = jnp.maximum(x @ p['w1'] + p['b1'], 0.0)
    x = ln(x, p['ln1_g'], p['ln1_b'])
    h = rnn_states[:, 0, :] * masks
    gi = x @ p['w_ih'] + p['b_ih']
    gh = h @ p['w_hh'] + p['b_hh']
    r = jax.nn.sigmoid(gi[:, :H] + gh[:, :H])
    z = jax.nn.sigmoid(gi[:, H:2 * H] + gh[:, H:2 * H])
    n = jnp.tanh(gi[:, 2 * H:] + r * gh[:, 2 * H:])
    h_new = (1.0 - z) * n + z * h
    feat = ln(h_new, p['lnr_g'], p['lnr_b'])
    dep_x = (parents_actions * execution_mask[..., None]).reshape(B, -1)
    d = ln(jnp.maximum(dep_x @ p['w_df'] + p['b_df'], 0.0), p['lnd_g'], p['lnd_b'])
    la = jnp.where(available_actions == 0.0, NEG_INF, feat @ p['w_act'] + p['b_act'])
    la = jax.nn.log_softmax(la, axis=-1)
    ld = jnp.concatenate([feat, d], -1) @ p['w_dep'] + p['b_dep']
    ld = jax.nn.log_softmax(jnp.where(available_actions == 0.0, NEG_INF, ld), axis=-1)
    xl = jnp.where(available_actions == 0.0, NEG_INF, la + ld)
    action = jnp.argmax(xl, axis=-1)[:, None].astype(jnp.int32)
    logp = jnp.take_along_axis(jax.nn.log_softmax(xl, -1), action, axis=-1)
    return action, logp, h_new[:, None, :], xl


if __name__ == "__main__":
    key = jax.random.PRNGKey(0)

    B, obs_dim, hidden = 8, 16, 64
    action_dim, num_agents, action_shape, recurrent_N = 8, 3, 1, 1

    k_obs, k_h, k_m, k_pa, k_ex, k_av, k_p = jax.random.split(key, 7)

    obs = jax.random.normal(k_obs, (B, obs_dim), jnp.float32)
    rnn_states = jax.random.normal(k_h, (B, recurrent_N, hidden), jnp.float32)
    masks = (jax.random.uniform(k_m, (B, 1)) > 0.2).astype(jnp.float32)
    parents_actions = jax.random.randint(
        k_pa, (B, num_agents, action_shape), 0, action_dim).astype(jnp.float32)
    execution_mask = (jax.random.uniform(k_ex, (B, num_agents)) > 0.5).astype(jnp.float32)
    available_actions = (jax.random.uniform(k_av, (B, action_dim)) > 0.3).astype(jnp.float32)
    available_actions = available_actions.at[:, 0].set(1.0)   # at least one legal action per row

    params = make_params(k_p, obs_dim, hidden, action_dim, num_agents, action_shape)
    packed = pack_params(params)

    actions, action_log_probs, rnn_states_out = r_actor_forward(
        obs, rnn_states, masks, parents_actions, execution_mask, available_actions, packed
    )
    jax.block_until_ready((actions, action_log_probs, rnn_states_out))

    # structural checks
    assert actions.shape == (B, 1) and actions.dtype == jnp.int32
    assert action_log_probs.shape == (B, 1)
    assert rnn_states_out.shape == (B, recurrent_N, hidden)
    assert bool(jnp.all(jnp.isfinite(action_log_probs)))
    assert bool(jnp.all((actions >= 0) & (actions < action_dim)))

    # numerical check against the pure-JAX reference (loose tolerances: matmul precision paths
    # may differ between XLA and Mosaic).
    a_ref, lp_ref, h_ref, xl_ref = r_actor_reference(
        params, obs, rnn_states, masks, parents_actions, execution_mask, available_actions)
    assert bool(jnp.allclose(rnn_states_out, h_ref, atol=2e-2, rtol=2e-2))
    assert bool(jnp.allclose(action_log_probs, lp_ref, atol=2e-2, rtol=2e-2))
    sel = jnp.take_along_axis(xl_ref, actions, axis=-1)
    assert bool(jnp.all(sel >= xl_ref.max(-1, keepdims=True) - 1e-2))   # argmax (up to fp ties)

    print("KERNEL_OK")
</pallas_src>

<mosaic_0001>
module attributes {stable_mosaic.version = 11 : i64} {
  func.func @kernel(%arg0: i32, %arg1: memref<8x128xf32, #tpu.memory_space<vmem>>, %arg2: memref<16x256xf32, #tpu.memory_space<vmem>>, %arg3: memref<128x512xf32, #tpu.memory_space<vmem>>, %arg4: memref<8x128xf32, #tpu.memory_space<vmem>>) attributes {dimension_semantics = [#tpu.dimension_semantics<parallel>], iteration_bounds = array<i64: 1>, scalar_prefetch = 0 : i64, scratch_operands = 0 : i64, tpu.core_type = #tpu.core_type<tc>, window_params = [{transform_indices = @transform_0, window_bounds = array<i64: 8, 128>}, {pipeline_mode = #tpu.pipeline_mode<synchronous>, transform_indices = @transform_1, window_bounds = array<i64: 16, 256>}, {pipeline_mode = #tpu.pipeline_mode<synchronous>, transform_indices = @transform_2, window_bounds = array<i64: 128, 512>}, {transform_indices = @transform_3, window_bounds = array<i64: 8, 128>}]} {
    %c0 = arith.constant 0 : index
    %c0_0 = arith.constant 0 : index
    %0 = vector.load %arg1[%c0, %c0_0] : memref<8x128xf32, #tpu.memory_space<vmem>>, vector<8x128xf32>
    %1 = vector.extract_strided_slice %0 {offsets = [0, 0], sizes = [8, 16], strides = [1, 1]} : vector<8x128xf32> to vector<8x16xf32>
    %2 = vector.extract_strided_slice %0 {offsets = [0, 16], sizes = [8, 64], strides = [1, 1]} : vector<8x128xf32> to vector<8x64xf32>
    %3 = vector.extract_strided_slice %0 {offsets = [0, 80], sizes = [8, 1], strides = [1, 1]} : vector<8x128xf32> to vector<8x1xf32>
    %4 = vector.extract_strided_slice %0 {offsets = [0, 81], sizes = [8, 3], strides = [1, 1]} : vector<8x128xf32> to vector<8x3xf32>
    %5 = vector.extract_strided_slice %0 {offsets = [0, 84], sizes = [8, 3], strides = [1, 1]} : vector<8x128xf32> to vector<8x3xf32>
    %6 = vector.extract_strided_slice %0 {offsets = [0, 87], sizes = [8, 8], strides = [1, 1]} : vector<8x128xf32> to vector<8x8xf32>
    %c0_1 = arith.constant 0 : index
    %c0_2 = arith.constant 0 : index
    %7 = vector.load %arg2[%c0_1, %c0_2] : memref<16x256xf32, #tpu.memory_space<vmem>>, vector<1x16xf32>
    %c1 = arith.constant 1 : index
    %c0_3 = arith.constant 0 : index
    %8 = vector.load %arg2[%c1, %c0_3] : memref<16x256xf32, #tpu.memory_space<vmem>>, vector<1x16xf32>
    %cst = arith.constant dense<0.000000e+00> : vector<8xf32>
    %9 = vector.multi_reduction <add>, %1, %cst [1] : vector<8x16xf32> to vector<8xf32>
    %10 = vector.shape_cast %9 : vector<8xf32> to vector<8x1xf32>
    %cst_4 = arith.constant 1.600000e+01 : f32
    %11 = vector.broadcast %cst_4 : f32 to vector<8x1xf32>
    %12 = arith.divf %10, %11 : vector<8x1xf32>
    %13 = vector.broadcast %12 : vector<8x1xf32> to vector<8x16xf32>
    %14 = arith.subf %1, %13 : vector<8x16xf32>
    %15 = arith.mulf %14, %14 : vector<8x16xf32>
    %cst_5 = arith.constant dense<0.000000e+00> : vector<8xf32>
    %16 = vector.multi_reduction <add>, %15, %cst_5 [1] : vector<8x16xf32> to vector<8xf32>
    %17 = vector.shape_cast %16 : vector<8xf32> to vector<8x1xf32>
    %cst_6 = arith.constant 1.600000e+01 : f32
    %18 = vector.broadcast %cst_6 : f32 to vector<8x1xf32>
    %19 = arith.divf %17, %18 : vector<8x1xf32>
    %20 = vector.broadcast %12 : vector<8x1xf32> to vector<8x16xf32>
    %21 = arith.subf %1, %20 : vector<8x16xf32>
    %cst_7 = arith.constant 9.99999974E-6 : f32
    %22 = vector.broadcast %cst_7 : f32 to vector<8x1xf32>
    %23 = arith.addf %19, %22 : vector<8x1xf32>
    %24 = math.rsqrt %23 : vector<8x1xf32>
    %25 = vector.broadcast %24 : vector<8x1xf32> to vector<8x16xf32>
    %26 = arith.mulf %21, %25 : vector<8x16xf32>
    %27 = vector.broadcast %7 : vector<1x16xf32> to vector<8x16xf32>
    %28 = arith.mulf %26, %27 : vector<8x16xf32>
    %29 = vector.broadcast %8 : vector<1x16xf32> to vector<8x16xf32>
    %30 = arith.addf %28, %29 : vector<8x16xf32>
    %c0_8 = arith.constant 0 : index
    %c384 = arith.constant 384 : index
    %31 = vector.load %arg3[%c0_8, %c384] : memref<128x512xf32, #tpu.memory_space<vmem>>, vector<16x64xf32>
    %cst_9 = arith.constant dense<0.000000e+00> : vector<8x64xf32>
    %32 = tpu.matmul %30, %31, %cst_9 {dimension_numbers = #tpu.dot_dimension_numbers<[1], [0], [0], [1], [0, 0, 1, 1], [], []>} : vector<8x16xf32>, vector<16x64xf32>, vector<8x64xf32> -> vector<8x64xf32>
    %c2 = arith.constant 2 : index
    %c0_10 = arith.constant 0 : index
    %33 = vector.load %arg2[%c2, %c0_10] : memref<16x256xf32, #tpu.memory_space<vmem>>, vector<1x64xf32>
    %34 = vector.broadcast %33 : vector<1x64xf32> to vector<8x64xf32>
    %35 = arith.addf %32, %34 : vector<8x64xf32>
    %cst_11 = arith.constant 0.000000e+00 : f32
    %36 = vector.broadcast %cst_11 : f32 to vector<8x64xf32>
    %37 = arith.maximumf %35, %36 : vector<8x64xf32>
    %c3 = arith.constant 3 : index
    %c0_12 = arith.constant 0 : index
    %38 = vector.load %arg2[%c3, %c0_12] : memref<16x256xf32, #tpu.memory_space<vmem>>, vector<1x64xf32>
    %c4 = arith.constant 4 : index
    %c0_13 = arith.constant 0 : index
    %39 = vector.load %arg2[%c4, %c0_13] : memref<16x256xf32, #tpu.memory_space<vmem>>, vector<1x64xf32>
    %cst_14 = arith.constant dense<0.000000e+00> : vector<8xf32>
    %40 = vector.multi_reduction <add>, %37, %cst_14 [1] : vector<8x64xf32> to vector<8xf32>
    %41 = vector.shape_cast %40 : vector<8xf32> to vector<8x1xf32>
    %cst_15 = arith.constant 6.400000e+01 : f32
    %42 = vector.broadcast %cst_15 : f32 to vector<8x1xf32>
    %43 = arith.divf %41, %42 : vector<8x1xf32>
    %44 = vector.broadcast %43 : vector<8x1xf32> to vector<8x64xf32>
    %45 = arith.subf %37, %44 : vector<8x64xf32>
    %46 = arith.mulf %45, %45 : vector<8x64xf32>
    %cst_16 = arith.constant dense<0.000000e+00> : vector<8xf32>
    %47 = vector.multi_reduction <add>, %46, %cst_16 [1] : vector<8x64xf32> to vector<8xf32>
    %48 = vector.shape_cast %47 : vector<8xf32> to vector<8x1xf32>
    %cst_17 = arith.constant 6.400000e+01 : f32
    %49 = vector.broadcast %cst_17 : f32 to vector<8x1xf32>
    %50 = arith.divf %48, %49 : vector<8x1xf32>
    %51 = vector.broadcast %43 : vector<8x1xf32> to vector<8x64xf32>
    %52 = arith.subf %37, %51 : vector<8x64xf32>
    %cst_18 = arith.constant 9.99999974E-6 : f32
    %53 = vector.broadcast %cst_18 : f32 to vector<8x1xf32>
    %54 = arith.addf %50, %53 : vector<8x1xf32>
    %55 = math.rsqrt %54 : vector<8x1xf32>
    %56 = vector.broadcast %55 : vector<8x1xf32> to vector<8x64xf32>
    %57 = arith.mulf %52, %56 : vector<8x64xf32>
    %58 = vector.broadcast %38 : vector<1x64xf32> to vector<8x64xf32>
    %59 = arith.mulf %57, %58 : vector<8x64xf32>
    %60 = vector.broadcast %39 : vector<1x64xf32> to vector<8x64xf32>
    %61 = arith.addf %59, %60 : vector<8x64xf32>
    %62 = vector.broadcast %3 : vector<8x1xf32> to vector<8x64xf32>
    %63 = arith.mulf %2, %62 : vector<8x64xf32>
    %c0_19 = arith.constant 0 : index
    %c0_20 = arith.constant 0 : index
    %64 = vector.load %arg3[%c0_19, %c0_20] : memref<128x512xf32, #tpu.memory_space<vmem>>, vector<64x256xf32>
    %cst_21 = arith.constant dense<0.000000e+00> : vector<8x256xf32>
    %65 = tpu.matmul %61, %64, %cst_21 {dimension_numbers = #tpu.dot_dimension_numbers<[1], [0], [0], [1], [0, 0, 1, 1], [], []>} : vector<8x64xf32>, vector<64x256xf32>, vector<8x256xf32> -> vector<8x256xf32>
    %c64 = arith.constant 64 : index
    %c0_22 = arith.constant 0 : index
    %66 = vector.load %arg3[%c64, %c0_22] : memref<128x512xf32, #tpu.memory_space<vmem>>, vector<64x256xf32>
    %cst_23 = arith.constant dense<0.000000e+00> : vector<8x256xf32>
    %67 = tpu.matmul %63, %66, %cst_23 {dimension_numbers = #tpu.dot_dimension_numbers<[1], [0], [0], [1], [0, 0, 1, 1], [], []>} : vector<8x64xf32>, vector<64x256xf32>, vector<8x256xf32> -> vector<8x256xf32>
    %68 = arith.addf %65, %67 : vector<8x256xf32>
    %c5 = arith.constant 5 : index
    %c0_24 = arith.constant 0 : index
    %69 = vector.load %arg2[%c5, %c0_24] : memref<16x256xf32, #tpu.memory_space<vmem>>, vector<1x256xf32>
    %70 = vector.broadcast %69 : vector<1x256xf32> to vector<8x256xf32>
    %71 = arith.addf %68, %70 : vector<8x256xf32>
    %72 = vector.extract_strided_slice %71 {offsets = [0, 0], sizes = [8, 64], strides = [1, 1]} : vector<8x256xf32> to vector<8x64xf32>
    %73 = arith.negf %72 : vector<8x64xf32>
    %74 = math.exp %73 : vector<8x64xf32>
    %cst_25 = arith.constant 1.000000e+00 : f32
    %75 = vector.broadcast %cst_25 : f32 to vector<8x64xf32>
    %76 = arith.addf %75, %74 : vector<8x64xf32>
    %77 = arith.divf %75, %76 : vector<8x64xf32>
    %78 = vector.extract_strided_slice %71 {offsets = [0, 64], sizes = [8, 64], strides = [1, 1]} : vector<8x256xf32> to vector<8x64xf32>
    %79 = arith.negf %78 : vector<8x64xf32>
    %80 = math.exp %79 : vector<8x64xf32>
    %cst_26 = arith.constant 1.000000e+00 : f32
    %81 = vector.broadcast %cst_26 : f32 to vector<8x64xf32>
    %82 = arith.addf %81, %80 : vector<8x64xf32>
    %83 = arith.divf %81, %82 : vector<8x64xf32>
    %84 = vector.extract_strided_slice %71 {offsets = [0, 128], sizes = [8, 64], strides = [1, 1]} : vector<8x256xf32> to vector<8x64xf32>
    %85 = vector.extract_strided_slice %71 {offsets = [0, 192], sizes = [8, 64], strides = [1, 1]} : vector<8x256xf32> to vector<8x64xf32>
    %86 = arith.mulf %77, %85 : vector<8x64xf32>
    %87 = arith.addf %84, %86 : vector<8x64xf32>
    %88 = math.tanh %87 : vector<8x64xf32>
    %cst_27 = arith.constant 1.000000e+00 : f32
    %89 = vector.broadcast %cst_27 : f32 to vector<8x64xf32>
    %90 = arith.subf %89, %83 : vector<8x64xf32>
    %91 = arith.mulf %90, %88 : vector<8x64xf32>
    %92 = arith.mulf %83, %63 : vector<8x64xf32>
    %93 = arith.addf %91, %92 : vector<8x64xf32>
    %c6 = arith.constant 6 : index
    %c0_28 = arith.constant 0 : index
    %94 = vector.load %arg2[%c6, %c0_28] : memref<16x256xf32, #tpu.memory_space<vmem>>, vector<1x64xf32>
    %c7 = arith.constant 7 : index
    %c0_29 = arith.constant 0 : index
    %95 = vector.load %arg2[%c7, %c0_29] : memref<16x256xf32, #tpu.memory_space<vmem>>, vector<1x64xf32>
    %cst_30 = arith.constant dense<0.000000e+00> : vector<8xf32>
    %96 = vector.multi_reduction <add>, %93, %cst_30 [1] : vector<8x64xf32> to vector<8xf32>
    %97 = vector.shape_cast %96 : vector<8xf32> to vector<8x1xf32>
    %cst_31 = arith.constant 6.400000e+01 : f32
    %98 = vector.broadcast %cst_31 : f32 to vector<8x1xf32>
    %99 = arith.divf %97, %98 : vector<8x1xf32>
    %100 = vector.broadcast %99 : vector<8x1xf32> to vector<8x64xf32>
    %101 = arith.subf %93, %100 : vector<8x64xf32>
    %102 = arith.mulf %101, %101 : vector<8x64xf32>
    %cst_32 = arith.constant dense<0.000000e+00> : vector<8xf32>
    %103 = vector.multi_reduction <add>, %102, %cst_32 [1] : vector<8x64xf32> to vector<8xf32>
    %104 = vector.shape_cast %103 : vector<8xf32> to vector<8x1xf32>
    %cst_33 = arith.constant 6.400000e+01 : f32
    %105 = vector.broadcast %cst_33 : f32 to vector<8x1xf32>
    %106 = arith.divf %104, %105 : vector<8x1xf32>
    %107 = vector.broadcast %99 : vector<8x1xf32> to vector<8x64xf32>
    %108 = arith.subf %93, %107 : vector<8x64xf32>
    %cst_34 = arith.constant 9.99999974E-6 : f32
    %109 = vector.broadcast %cst_34 : f32 to vector<8x1xf32>
    %110 = arith.addf %106, %109 : vector<8x1xf32>
    %111 = math.rsqrt %110 : vector<8x1xf32>
    %112 = vector.broadcast %111 : vector<8x1xf32> to vector<8x64xf32>
    %113 = arith.mulf %108, %112 : vector<8x64xf32>
    %114 = vector.broadcast %94 : vector<1x64xf32> to vector<8x64xf32>
    %115 = arith.mulf %113, %114 : vector<8x64xf32>
    %116 = vector.broadcast %95 : vector<1x64xf32> to vector<8x64xf32>
    %117 = arith.addf %115, %116 : vector<8x64xf32>
    %118 = arith.mulf %4, %5 : vector<8x3xf32>
    %c8 = arith.constant 8 : index
    %c0_35 = arith.constant 0 : index
    %119 = vector.load %arg2[%c8, %c0_35] : memref<16x256xf32, #tpu.memory_space<vmem>>, vector<1x64xf32>
    %120 = vector.extract_strided_slice %118 {offsets = [0, 0], sizes = [8, 1], strides = [1, 1]} : vector<8x3xf32> to vector<8x1xf32>
    %c12 = arith.constant 12 : index
    %c0_36 = arith.constant 0 : index
    %121 = vector.load %arg2[%c12, %c0_36] : memref<16x256xf32, #tpu.memory_space<vmem>>, vector<1x64xf32>
    %122 = vector.broadcast %120 : vector<8x1xf32> to vector<8x64xf32>
    %123 = vector.broadcast %121 : vector<1x64xf32> to vector<8x64xf32>
    %124 = arith.mulf %122, %123 : vector<8x64xf32>
    %125 = vector.broadcast %119 : vector<1x64xf32> to vector<8x64xf32>
    %126 = arith.addf %125, %124 : vector<8x64xf32>
    %127 = vector.extract_strided_slice %118 {offsets = [0, 1], sizes = [8, 1], strides = [1, 1]} : vector<8x3xf32> to vector<8x1xf32>
    %c13 = arith.constant 13 : index
    %c0_37 = arith.constant 0 : index
    %128 = vector.load %arg2[%c13, %c0_37] : memref<16x256xf32, #tpu.memory_space<vmem>>, vector<1x64xf32>
    %129 = vector.broadcast %127 : vector<8x1xf32> to vector<8x64xf32>
    %130 = vector.broadcast %128 : vector<1x64xf32> to vector<8x64xf32>
    %131 = arith.mulf %129, %130 : vector<8x64xf32>
    %132 = arith.addf %126, %131 : vector<8x64xf32>
    %133 = vector.extract_strided_slice %118 {offsets = [0, 2], sizes = [8, 1], strides = [1, 1]} : vector<8x3xf32> to vector<8x1xf32>
    %c14 = arith.constant 14 : index
    %c0_38 = arith.constant 0 : index
    %134 = vector.load %arg2[%c14, %c0_38] : memref<16x256xf32, #tpu.memory_space<vmem>>, vector<1x64xf32>
    %135 = vector.broadcast %133 : vector<8x1xf32> to vector<8x64xf32>
    %136 = vector.broadcast %134 : vector<1x64xf32> to vector<8x64xf32>
    %137 = arith.mulf %135, %136 : vector<8x64xf32>
    %138 = arith.addf %132, %137 : vector<8x64xf32>
    %cst_39 = arith.constant 0.000000e+00 : f32
    %139 = vector.broadcast %cst_39 : f32 to vector<8x64xf32>
    %140 = arith.maximumf %138, %139 : vector<8x64xf32>
    %c9 = arith.constant 9 : index
    %c0_40 = arith.constant 0 : index
    %141 = vector.load %arg2[%c9, %c0_40] : memref<16x256xf32, #tpu.memory_space<vmem>>, vector<1x64xf32>
    %c10 = arith.constant 10 : index
    %c0_41 = arith.constant 0 : index
    %142 = vector.load %arg2[%c10, %c0_41] : memref<16x256xf32, #tpu.memory_space<vmem>>, vector<1x64xf32>
    %cst_42 = arith.constant dense<0.000000e+00> : vector<8xf32>
    %143 = vector.multi_reduction <add>, %140, %cst_42 [1] : vector<8x64xf32> to vector<8xf32>
    %144 = vector.shape_cast %143 : vector<8xf32> to vector<8x1xf32>
    %cst_43 = arith.constant 6.400000e+01 : f32
    %145 = vector.broadcast %cst_43 : f32 to vector<8x1xf32>
    %146 = arith.divf %144, %145 : vector<8x1xf32>
    %147 = vector.broadcast %146 : vector<8x1xf32> to vector<8x64xf32>
    %148 = arith.subf %140, %147 : vector<8x64xf32>
    %149 = arith.mulf %148, %148 : vector<8x64xf32>
    %cst_44 = arith.constant dense<0.000000e+00> : vector<8xf32>
    %150 = vector.multi_reduction <add>, %149, %cst_44 [1] : vector<8x64xf32> to vector<8xf32>
    %151 = vector.shape_cast %150 : vector<8xf32> to vector<8x1xf32>
    %cst_45 = arith.constant 6.400000e+01 : f32
    %152 = vector.broadcast %cst_45 : f32 to vector<8x1xf32>
    %153 = arith.divf %151, %152 : vector<8x1xf32>
    %154 = vector.broadcast %146 : vector<8x1xf32> to vector<8x64xf32>
    %155 = arith.subf %140, %154 : vector<8x64xf32>
    %cst_46 = arith.constant 9.99999974E-6 : f32
    %156 = vector.broadcast %cst_46 : f32 to vector<8x1xf32>
    %157 = arith.addf %153, %156 : vector<8x1xf32>
    %158 = math.rsqrt %157 : vector<8x1xf32>
    %159 = vector.broadcast %158 : vector<8x1xf32> to vector<8x64xf32>
    %160 = arith.mulf %155, %159 : vector<8x64xf32>
    %161 = vector.broadcast %141 : vector<1x64xf32> to vector<8x64xf32>
    %162 = arith.mulf %160, %161 : vector<8x64xf32>
    %163 = vector.broadcast %142 : vector<1x64xf32> to vector<8x64xf32>
    %164 = arith.addf %162, %163 : vector<8x64xf32>
    %c0_47 = arith.constant 0 : index
    %c256 = arith.constant 256 : index
    %165 = vector.load %arg3[%c0_47, %c256] : memref<128x512xf32, #tpu.memory_space<vmem>>, vector<64x8xf32>
    %cst_48 = arith.constant dense<0.000000e+00> : vector<8x8xf32>
    %166 = tpu.matmul %117, %165, %cst_48 {dimension_numbers = #tpu.dot_dimension_numbers<[1], [0], [0], [1], [0, 0, 1, 1], [], []>} : vector<8x64xf32>, vector<64x8xf32>, vector<8x8xf32> -> vector<8x8xf32>
    %c64_49 = arith.constant 64 : index
    %c256_50 = arith.constant 256 : index
    %167 = vector.load %arg3[%c64_49, %c256_50] : memref<128x512xf32, #tpu.memory_space<vmem>>, vector<64x8xf32>
    %cst_51 = arith.constant dense<0.000000e+00> : vector<8x8xf32>
    %168 = tpu.matmul %164, %167, %cst_51 {dimension_numbers = #tpu.dot_dimension_numbers<[1], [0], [0], [1], [0, 0, 1, 1], [], []>} : vector<8x64xf32>, vector<64x8xf32>, vector<8x8xf32> -> vector<8x8xf32>
    %169 = arith.addf %166, %168 : vector<8x8xf32>
    %c11 = arith.constant 11 : index
    %c0_52 = arith.constant 0 : index
    %170 = vector.load %arg2[%c11, %c0_52] : memref<16x256xf32, #tpu.memory_space<vmem>>, vector<1x8xf32>
    %171 = vector.broadcast %170 : vector<1x8xf32> to vector<8x8xf32>
    %172 = arith.addf %169, %171 : vector<8x8xf32>
    %cst_53 = arith.constant 0.000000e+00 : f32
    %173 = vector.broadcast %cst_53 : f32 to vector<8x8xf32>
    %174 = arith.cmpf oeq, %6, %173 : vector<8x8xf32>
    %cst_54 = arith.constant -1.000000e+10 : f32
    %175 = vector.broadcast %cst_54 : f32 to vector<8x8xf32>
    %176 = arith.select %174, %175, %172 : vector<8x8xi1>, vector<8x8xf32>
    %cst_55 = arith.constant dense<0xFF800000> : vector<8xf32>
    %177 = vector.multi_reduction <maximumf>, %176, %cst_55 [1] : vector<8x8xf32> to vector<8xf32>
    %178 = vector.shape_cast %177 : vector<8xf32> to vector<8x1xf32>
    %179 = tpu.iota {dimensions = array<i32: 1>} : vector<8x8xi32>
    %180 = vector.broadcast %178 : vector<8x1xf32> to vector<8x8xf32>
    %181 = arith.cmpf oeq, %176, %180 : vector<8x8xf32>
    %c8_i32 = arith.constant 8 : i32
    %182 = vector.broadcast %c8_i32 : i32 to vector<8x8xi32>
    %183 = arith.select %181, %179, %182 : vector<8x8xi1>, vector<8x8xi32>
    %cst_56 = arith.constant dense<2147483647> : vector<8xi32>
    %184 = vector.multi_reduction <minsi>, %183, %cst_56 [1] : vector<8x8xi32> to vector<8xi32>
    %185 = vector.shape_cast %184 : vector<8xi32> to vector<8x1xi32>
    %186 = vector.broadcast %178 : vector<8x1xf32> to vector<8x8xf32>
    %187 = arith.subf %176, %186 : vector<8x8xf32>
    %188 = math.exp %187 : vector<8x8xf32>
    %cst_57 = arith.constant dense<0.000000e+00> : vector<8xf32>
    %189 = vector.multi_reduction <add>, %188, %cst_57 [1] : vector<8x8xf32> to vector<8xf32>
    %190 = vector.shape_cast %189 : vector<8xf32> to vector<8x1xf32>
    %191 = math.log %190 : vector<8x1xf32>
    %192 = arith.addf %178, %191 : vector<8x1xf32>
    %193 = vector.broadcast %185 : vector<8x1xi32> to vector<8x8xi32>
    %194 = arith.cmpi eq, %179, %193 : vector<8x8xi32>
    %195 = vector.broadcast %192 : vector<8x1xf32> to vector<8x8xf32>
    %196 = arith.subf %176, %195 : vector<8x8xf32>
    %cst_58 = arith.constant 0.000000e+00 : f32
    %197 = vector.broadcast %cst_58 : f32 to vector<8x8xf32>
    %198 = arith.select %194, %196, %197 : vector<8x8xi1>, vector<8x8xf32>
    %cst_59 = arith.constant dense<0.000000e+00> : vector<8xf32>
    %199 = vector.multi_reduction <add>, %198, %cst_59 [1] : vector<8x8xf32> to vector<8xf32>
    %200 = vector.shape_cast %199 : vector<8xf32> to vector<8x1xf32>
    %cst_60 = arith.constant 0.000000e+00 : f32
    %201 = vector.broadcast %cst_60 : f32 to vector<8x62xf32>
    %202 = arith.sitofp %185 : vector<8x1xi32> to vector<8x1xf32>
    %203 = tpu.concatenate %93, %202, %200, %201 in 1 : vector<8x64xf32>, vector<8x1xf32>, vector<8x1xf32>, vector<8x62xf32> -> vector<8x128xf32>
    %c0_61 = arith.constant 0 : index
    %c0_62 = arith.constant 0 : index
    %204 = vector.load %arg4[%c0_61, %c0_62] : memref<8x128xf32, #tpu.memory_space<vmem>>, vector<8x128xf32>
    tpu.vector_store %arg4[%c0_61, %c0_62], %203 {strides = array<i32>} : memref<8x128xf32, #tpu.memory_space<vmem>>, vector<8x128xf32>,
    return
  }
  func.func @transform_0(%arg0: i32) -> (i32, i32) {
    %c0_i32 = arith.constant 0 : i32
    %c0_i32_0 = arith.constant 0 : i32
    return %arg0, %c0_i32 : i32, i32
  }
  func.func @transform_1(%arg0: i32) -> (i32, i32) {
    %c0_i32 = arith.constant 0 : i32
    %c0_i32_0 = arith.constant 0 : i32
    %c0_i32_1 = arith.constant 0 : i32
    return %c0_i32, %c0_i32_0 : i32, i32
  }
  func.func @transform_2(%arg0: i32) -> (i32, i32) {
    %c0_i32 = arith.constant 0 : i32
    %c0_i32_0 = arith.constant 0 : i32
    %c0_i32_1 = arith.constant 0 : i32
    return %c0_i32, %c0_i32_0 : i32, i32
  }
  func.func @transform_3(%arg0: i32) -> (i32, i32) {
    %c0_i32 = arith.constant 0 : i32
    %c0_i32_0 = arith.constant 0 : i32
    return %arg0, %c0_i32 : i32, i32
  }
}

</mosaic_0001>

<bundles_post_ra>
// kernel: tpu_custom_call.1
= control target key start
LH: loop header
LB: loop body
LE: loop exit
PB: predicated region body
PF: predicated region fallthrough
CT: control target
= control target key end

     0   :  { %8 = vsyncpa [#allocation3], 0  ;;  %s1137_s0 = inlined_call_operand.hbm [shape: f32[8,128], index: 0, kind: input, shape index: {}]   ;;  %s1138_s1 = inlined_call_operand.hbm [shape: f32[16,256], index: 1, kind: input, shape index: {}]   ;;  %s1139_s2 = inlined_call_operand.hbm [shape: f32[128,512], index: 2, kind: input, shape index: {}]   ;;  %s1140_s3 = inlined_call_operand.hbm [shape: f32[8,128], index: 3, kind: output, shape index: {}]  }
   0x1   :  { %9 = vsyncpa [#allocation6], 0 }
   0x2   :  { %10 = vsyncpa [#allocation4], 0  ;;  %s989_s12 = smov [#allocation5]   ;;  %s895_s16 = scalar_lea.hbm %s1138_s1, 512 }
   0x3   :  { %s26_s13 = sshll.u32 %s989_s12, 4  ;;  %p896_p0 = scmp.ne.s32.totalorder %s1138_s1, %s895_s16  ;;  %s27_s13 = int_to_ptr.vmem [resolvable:$true] %s26_s13 }
   0x4   :  { %p899_p1 = scmp.lt.u32.totalorder %s895_s16, %s1138_s1 }
   0x6   :  { %p901_p2 = pnand %p899_p1, %p896_p0 }
   0x8   :  { %904 = shalt.err (!%p901_p2)
}
   0x9   :  { %s905_s21 = scalar_lea.vmem %s27_s13, 512  ;;  %p910_p4 = scmp.lt.s32.totalorder %s27_s13, %s27_s13 }
   0xa   :  { %p906_p3 = scmp.ne.s32.totalorder %s27_s13, %s905_s21  ;;  %p911_p5 = scmp.lt.s32.totalorder %s905_s21, %s905_s21 }
   0xc   :  { %p912_p6 = por %p911_p5, %p910_p4 }
   0xe   :  { %p913_p7 = pnand %p912_p6, %p906_p3 }
  0x10   :  { %916 = shalt.err (!%p913_p7)
}
  0x11   :  { %s990_s22 = smov 256   ;;  %s991_s23 = smov 16  }
  0x12   :  { %32 = dma.hbm_to_vmem [thread:$0]  %s1138_s1, 512, %s27_s13, [#allocation6], %s990_s22, %s990_s22, %s991_s23  }
  0x13   :  { %s992_s26 = smov [#allocation2]   ;;  %s993_s28 = smov [#allocation7]  }
  0x14   :  { %s17_s27 = sshll.u32 %s992_s26, 4  ;;  %s38_s29 = sshll.u32 %s993_s28, 4  ;;  %s18_s27 = int_to_ptr.vmem [resolvable:$true] %s17_s27  ;;  %s39_s29 = int_to_ptr.vmem [resolvable:$true] %s38_s29 }
  0x15   :  { %s917_s5 = scalar_lea.hbm %s1137_s0, 128 }
  0x16   :  { %p918_p8 = scmp.ne.s32.totalorder %s1137_s0, %s917_s5  ;;  %p921_p9 = scmp.lt.u32.totalorder %s917_s5, %s1137_s0 }
  0x18   :  { %p923_p10 = pnand %p921_p9, %p918_p8 }
  0x1a   :  { %926 = shalt.err (!%p923_p10)
}
  0x1b   :  { %s927_s1 = scalar_lea.vmem %s18_s27, 128  ;;  %p932_p12 = scmp.lt.s32.totalorder %s18_s27, %s18_s27 }
  0x1c   :  { %p928_p11 = scmp.ne.s32.totalorder %s18_s27, %s927_s1  ;;  %p933_p13 = scmp.lt.s32.totalorder %s927_s1, %s927_s1 }
  0x1e   :  { %p934_p0 = por %p933_p13, %p932_p12 }
  0x20   :  { %p935_p1 = pnand %p934_p0, %p928_p11 }
  0x22   :  { %938 = shalt.err (!%p935_p1)
}
  0x23   :  { %20 = dma.hbm_to_vmem [thread:$0]  %s1137_s0, 128, %s18_s27, [#allocation3]  }
  0x24   :  { %s939_s14 = scalar_lea.hbm %s1139_s2, 8192 }
  0x25   :  { %p940_p2 = scmp.ne.s32.totalorder %s1139_s2, %s939_s14  ;;  %p943_p3 = scmp.lt.u32.totalorder %s939_s14, %s1139_s2 }
  0x27   :  { %p945_p4 = pnand %p943_p3, %p940_p2 }
  0x29   :  { %948 = shalt.err (!%p945_p4)
}
  0x2a   :  { %s949_s19 = scalar_lea.vmem %s39_s29, 8192  ;;  %p954_p6 = scmp.lt.s32.totalorder %s39_s29, %s39_s29 }
  0x2b   :  { %p950_p5 = scmp.ne.s32.totalorder %s39_s29, %s949_s19  ;;  %p955_p7 = scmp.lt.s32.totalorder %s949_s19, %s949_s19 }
  0x2d   :  { %p956_p8 = por %p955_p7, %p954_p6 }
  0x2f   :  { %p957_p9 = pnand %p956_p8, %p950_p5 }
  0x31   :  { %960 = shalt.err (!%p957_p9)
}
  0x32   :  { %s994_s0 = smov 512   ;;  %s995_s20 = smov 32  }
  0x33   :  { %44 = dma.hbm_to_vmem [thread:$0]  %s1139_s2, 8192, %s39_s29, [#allocation6], %s994_s0, %s994_s0, %s995_s20  }
  0x34   :  { %983 = dma.done.wait [#allocation3], 128  }
  0x35   :  { %984 = vsyncadd [#allocation3], 4294967168 }
  0x36   :  { %985 = dma.done.wait [#allocation6], 8704  }
  0x37   :  { %986 = vsyncadd [#allocation6], 4294958592  ;;  %vm57_vm0 = vcmask 130048   ;;  %v1066_v0 = vld [vmem:[#allocation2] sm:$0xff]  ;;  %v996_v9 = vmov 0.0|0.0   ;;  %vm997_vm1 = vmmov 0  }
  0x38   :  { %v58_v1 = vsel %vm57_vm0, %v1066_v0, 0.0  ;;  %v74_v7 = vld [vmem:[#allocation7 + $0x18] sm:$0xff]  ;;  %791 = vmatprep.subr.bf16.mxu0 %v996_v9  ;;  %v998_v11 = vmov 0.0   ;;  %v55_v16 = vld [vmem:[#allocation5] ss:$0 sm:$0xff]  ;;  %v999_v21 = vmov 80  }
  0x39   :  { %59 = vadd.xlane.f32.xlu0 %v58_v1  ;;  %v75_v8 = vld [vmem:[#allocation7 + $0x38] sm:$0xff]  ;;  %750 = vmatprep.mubr.msk.f32.mxu0 %vm997_vm1, %v998_v11  ;;  %v56_v18 = vld [vmem:[#allocation5 + $0x1] ss:$0 sm:$0xff]  ;;  %v76_v22 = vld [vmem:[#allocation5 + $0x2] ss:$0 sm:$0xff]  ;;  %vm153_vm2 = vcmask 523264  }
  0x3a   :  { %v792_v10 = vpack.c.bf16 %v75_v8, %v74_v7  ;;  %277 = vmatprep.mubr.f32.mxu1 %v998_v11  ;;  %873 = vset.pattern.permute.xlu1 %v999_v21  ;;  %v193_v28 = vld [vmem:[#allocation7 + $0x108] sm:$0xff]  ;;  %v192_v30 = vld [vmem:[#allocation7 + $0x100] sm:$0xff]  ;;  %s1000_s2 = smov 112   ;;  %s1001_s23 = smov 64   ;;  %vm641_vm3 = vcmp.eq.f32.partialorder %v1066_v0, 0.0  ;;  %vm647_vm4 = vcmask 777912  }
  0x3b   :  { %v195_v29 = vld [vmem:[#allocation7 + $0x128] sm:$0xff]  ;;  %v194_v32 = vld [vmem:[#allocation7 + $0x120] sm:$0xff]  ;;  %s1002_s24 = smov 125   ;;  %s1003_s25 = smov 48   ;;  %vm679_vm6 = vcmask 64512   ;;  %vm698_vm9 = vcmask 531456  }
  0x3c   :  { %793 = vmatpush3.bf16.msra.mxu0 %v792_v10  ;;  %v794_v31 = vpack.c.bf16 %v195_v29, %v193_v28  ;;  %v197_v33 = vld [vmem:[#allocation7 + $0x148] sm:$0xff]  ;;  %v796_v35 = vpack.c.bf16 %v194_v32, %v192_v30  ;;  %v196_v37 = vld [vmem:[#allocation7 + $0x140] sm:$0xff]  ;;  %v361_v32 = vlaneseq  ;;  %s1007_s26 = smov 87   ;;  %s1008_s27 = smov 41   ;;  %vm700_vm10 = vcmask 539648  }
  0x3d   :  { %826 = vmatprep.subr.bf16.mxu0 %v996_v9  ;;  %v199_v34 = vld [vmem:[#allocation7 + $0x168] sm:$0xff]  ;;  %v198_v38 = vld [vmem:[#allocation7 + $0x160] sm:$0xff]  ;;  %s1009_s28 = smov [#allocation8]  }
  0x3e   :  { %v798_v36 = vpack.c.bf16 %v199_v34, %v197_v33  ;;  %v201_v39 = vld [vmem:[#allocation7 + $0x188] sm:$0xff]  ;;  %795 = vmatprep.subr.bf16.mxu1 %v794_v31  ;;  %v800_v41 = vpack.c.bf16 %v198_v38, %v196_v37  ;;  %v200_v43 = vld [vmem:[#allocation7 + $0x180] sm:$0xff]  ;;  %v362_v33 = vshrl.u32 %v361_v32, 7  ;;  %s709_s29 = sshll.u32 %s1009_s28, 4  ;;  %s710_s29 = int_to_ptr.vmem [resolvable:$true] %s709_s29 }
  0x3f   :  { %v203_v40 = vld [vmem:[#allocation7 + $0x1a8] sm:$0xff]  ;;  %797 = vmatpush1.bf16.msra.mxu1 %v796_v35  ;;  %v202_v44 = vld [vmem:[#allocation7 + $0x1a0] sm:$0xff]  ;;  %s961_s30 = scalar_lea.vmem %s710_s29, 128  ;;  %p966_p11 = scmp.lt.s32.totalorder %s710_s29, %s710_s29 }
  0x40   :  { %799 = vmatprep.subr.bf16.mxu1 %v798_v36  ;;  %v802_v42 = vpack.c.bf16 %v203_v40, %v201_v39  ;;  %v804_v45 = vpack.c.bf16 %v202_v44, %v200_v43  ;;  %v205_v51 = vld [vmem:[#allocation7 + $0x1c8] sm:$0xff]  ;;  %v204_v54 = vld [vmem:[#allocation7 + $0x1c0] sm:$0xff]  ;;  %v363_v34 = vsub.s32 0, %v362_v33  ;;  %v367_v37 = vsub.s32 1, %v362_v33  ;;  %v484_v33 = vld [vmem:[#allocation7 + $0x130] sm:$0xff]  ;;  %p962_p10 = scmp.ne.s32.totalorder %s710_s29, %s961_s30  ;;  %p967_p12 = scmp.lt.s32.totalorder %s961_s30, %s961_s30 }
  0x41   :  { %v207_v52 = vld [vmem:[#allocation7 + $0x1e8] sm:$0xff]  ;;  %v206_v55 = vld [vmem:[#allocation7 + $0x1e0] sm:$0xff] }
  0x42   :  { %v806_v53 = vpack.c.bf16 %v207_v52, %v205_v51  ;;  %v808_v56 = vpack.c.bf16 %v206_v55, %v204_v54  ;;  %v177_v58 = vld [vmem:[#allocation7 + $0x8] sm:$0xff]  ;;  %v176_v62 = vld [vmem:[#allocation7] sm:$0xff]  ;;  %p968_p13 = por %p967_p12, %p966_p11 }
  0x43   :  { %801 = vmatpush1.bf16.msra.mxu1 %v800_v41  ;;  %v179_v59 = vld [vmem:[#allocation7 + $0x28] sm:$0xff]  ;;  %v178_v63 = vld [vmem:[#allocation7 + $0x20] sm:$0xff] }
  0x44   :  { %803 = vmatprep.subr.bf16.mxu1 %v802_v42  ;;  %v810_v60 = vpack.c.bf16 %v179_v59, %v177_v58  ;;  %v180_v8 = vld [vmem:[#allocation7 + $0x40] sm:$0xff]  ;;  %p969_p0 = pnand %p968_p13, %p962_p10 }
  0x45   :  { %v182_v10 = vld [vmem:[#allocation7 + $0x60] sm:$0xff] }
  0x46   :  { %v152_v29 = vld [vmem:[#allocation5 + $0x4] ss:$0 sm:$0xff]  ;;  %v359_v35 = vld [vmem:[#allocation5 + $0x5] ss:$8 sm:$0x3] }
  0x47   :  { %805 = vmatpush1.bf16.msra.mxu1 %v804_v45  ;;  %v364_v36 = vrot.slane %v359_v35, %v363_v34  ;;  %v368_v38 = vrot.slane %v359_v35, %v367_v37  ;;  %v485_v35 = vld [vmem:[#allocation7 + $0x150] sm:$0xff] }
  0x48   :  { %807 = vmatprep.subr.bf16.mxu1 %v806_v53  ;;  %v1004_v53 = vmov 81  }
  0x49   :  { %874 = vset.pattern.permute.xlu0 %v1004_v53 }
  0x4b   :  { %809 = vmatpush1.bf16.msra.mxu1 %v808_v56 }
  0x4c   :  { %811 = vmatprep.subr.bf16.mxu1 %v810_v60 }
  0xc6   :  { %v60_v2 = vpop.xlane.xlu0 %59 }
  0xc7   :  { %v62_v3 = vmul.f32 0.0625, %v60_v2  ;;  %v181_v2 = vld [vmem:[#allocation7 + $0x48] sm:$0xff] }
  0xc9   :  { %v63_v4 = vsub.f32 %v1066_v0, %v62_v3  ;;  %v183_v3 = vld [vmem:[#allocation7 + $0x68] sm:$0xff] }
  0xca   :  { %v814_v7 = vpack.c.bf16 %v183_v3, %v181_v2 }
  0xcb   :  { %v64_v5 = vmul.f32 %v63_v4, %v63_v4 }
  0xcd   :  { %v65_v6 = vsel %vm57_vm0, %v64_v5, 0.0  ;;  %v812_v5 = vpack.c.bf16 %v178_v63, %v176_v62  ;;  %v1006_v62 = vmov 83  }
  0xce   :  { %66 = vadd.xlane.f32.xlu0 %v65_v6 }
 0x15b   :  { %v67_v12 = vpop.xlane.xlu0 %66 }
 0x15c   :  { %v68_v13 = vmul.f32 0.0625, %v67_v12 }
 0x15e   :  { %v69_v14 = vadd.f32 1e-05, %v68_v13  ;;  %v185_v13 = vld [vmem:[#allocation7 + $0x88] sm:$0xff] }
 0x160   :  { %877 = vrsqrt.f32 %v69_v14  ;;  %v187_v14 = vld [vmem:[#allocation7 + $0xa8] sm:$0xff] }
 0x16a   :  { %v878_v15 = vpop.eup %877 }
 0x16b   :  { %v71_v17 = vmul.f32 %v878_v15, %v63_v4  ;;  %v816_v15 = vpack.c.bf16 %v182_v10, %v180_v8 }
 0x16d   :  { %v72_v19 = vmul.f32 %v71_v17, %v55_v16  ;;  %v818_v16 = vpack.c.bf16 %v187_v14, %v185_v13  ;;  %v184_v17 = vld [vmem:[#allocation7 + $0x80] sm:$0xff]  ;;  %v443_v13 = vld [vmem:[#allocation5 + $0x15] ss:$0 sm:$0xff] }
 0x16f   :  { %v73_v20 = vadd.f32 %v72_v19, %v56_v18  ;;  %v186_v18 = vld [vmem:[#allocation7 + $0xa0] sm:$0xff]  ;;  %v189_v19 = vld [vmem:[#allocation7 + $0xc8] sm:$0xff] }
 0x170   :  { %v820_v21 = vpack.c.bf16 %v186_v18, %v184_v17 }
 0x171   :  { %751 = vmatmul.mubr.msk.f32.vlgmr.msra.gmra.mrb[0].mxu0 %vm57_vm0, %v73_v20  ;;  %v191_v20 = vld [vmem:[#allocation7 + $0xe8] sm:$0xff] }
 0x172   :  { %769 = vmatprep.mubr.msk.f32.mxu0 %vm997_vm1, %v998_v11 }
 0x244   :  { %v146_v23 = vpop.f32.mrb[0].mxu0 }
 0x245   :  { %v147_v24 = vadd.f32 %v146_v23, %v76_v22  ;;  %v752_v25 = vpop.f32.mrb[1].mxu0  ;;  %v822_v22 = vpack.c.bf16 %v191_v20, %v189_v19  ;;  %v188_v23 = vld [vmem:[#allocation7 + $0xc0] sm:$0xff] }
 0x247   :  { %v150_v26 = vmax.f32 %v147_v24, 0.0  ;;  %v190_v24 = vld [vmem:[#allocation7 + $0xe0] sm:$0xff] }
 0x248   :  { %v824_v25 = vpack.c.bf16 %v190_v24, %v188_v23 }
 0x249   :  { %v154_v27 = vsel %vm153_vm2, %v150_v26, 0.0 }
 0x24a   :  { %155 = vadd.xlane.f32.xlu1 %v154_v27  ;;  %v151_v27 = vld [vmem:[#allocation5 + $0x3] ss:$0 sm:$0xff] }
 0x25b   :  { %172 = vperm.xlu1 %873, %v1066_v0  }
 0x2d7   :  { %v156_v46 = vpop.xlane.xlu1 %155 }
 0x2d8   :  { %v158_v47 = vmul.f32 0.015625, %v156_v46 }
 0x2da   :  { %v159_v48 = vsub.f32 %v150_v26, %v158_v47 }
 0x2db   :  { %v173_v57 = vpop.permute.xlu1 %172 }
 0x2dc   :  { %v160_v49 = vmul.f32 %v159_v48, %v159_v48  ;;  %v1084_v61 = vmul.f32 %v173_v57, %v1066_v0  ;;  %v1005_v57 = vmov 82  }
 0x2de   :  { %v161_v50 = vsel %vm153_vm2, %v160_v49, 0.0 }
 0x2df   :  { %162 = vadd.xlane.f32.xlu0 %v161_v50 }
 0x2f5   :  { %209 = vrot.lane.b32.xlu0 %v1084_v61, %s1000_s2 }
 0x2f9   :  { %430 = vrot.lane.b32.xlu0 %v1066_v0, %s1002_s24 }
 0x36c   :  { %v163_v1 = vpop.xlane.xlu0 %162 }
 0x36d   :  { %v164_v4 = vmul.f32 0.015625, %v163_v1  ;;  %v397_v1 = vld [vmem:[#allocation5 + $0x6] ss:$0 sm:$0xff] }
 0x36f   :  { %v165_v6 = vadd.f32 1e-05, %v164_v4 }
 0x370   :  { %v210_v12 = vpop.permute.xlu0 %209 }
 0x371   :  { %879 = vrsqrt.f32 %v165_v6  ;;  %720 = vmatmul.mubr.msk.f32.vlgmr.msra.gmra.mrb[0].mxu1 %vm153_vm2, %v210_v12  ;;  %v434_v12 = vld [vmem:[#allocation5 + $0x10] ss:$0 sm:$0xff] }
 0x372   :  { %813 = vmatpush1.bf16.msra.mxu1 %v812_v5  ;;  %351 = vmatprep.mubr.f32.mxu1 %v998_v11 }
 0x373   :  { %815 = vmatprep.subr.bf16.mxu1 %v814_v7  ;;  %v435_v7 = vld [vmem:[#allocation5 + $0x14] ss:$0 sm:$0xff] }
 0x374   :  { %v431_v51 = vpop.permute.xlu0 %430 }
 0x375   :  { %v433_v52 = vmul.f32 %v431_v51, %v1066_v0 }
 0x376   :  { %817 = vmatpush1.bf16.msra.mxu1 %v816_v15 }
 0x377   :  { %819 = vmatprep.subr.bf16.mxu1 %v818_v16  ;;  %438 = vperm.xlu0 %874, %v433_v52   ;;  %v450_v16 = vld [vmem:[#allocation5 + $0x16] ss:$0 sm:$0xff] }
 0x37a   :  { %821 = vmatpush1.bf16.msra.mxu1 %v820_v21 }
 0x37b   :  { %v880_v26 = vpop.eup %879  ;;  %823 = vmatprep.subr.bf16.mxu1 %v822_v22  ;;  %875 = vset.pattern.permute.xlu0 %v1005_v57  ;;  %v458_v57 = vld [vmem:[#allocation5 + $0x11] ss:$0 sm:$0xff] }
 0x37c   :  { %v167_v28 = vmul.f32 %v880_v26, %v159_v48  ;;  %445 = vperm.xlu0 %875, %v433_v52  }
 0x37e   :  { %825 = vmatpush1.bf16.msra.mxu1 %v824_v25  ;;  %v168_v30 = vmul.f32 %v167_v28, %v151_v27  ;;  %v398_v25 = vld [vmem:[#allocation5 + $0x7] ss:$0 sm:$0xff] }
 0x380   :  { %v169_v31 = vadd.f32 %v168_v30, %v152_v29  ;;  %876 = vset.pattern.permute.xlu0 %v1006_v62  ;;  %v459_v62 = vld [vmem:[#allocation5 + $0x12] ss:$0 sm:$0xff] }
 0x381   :  { %452 = vperm.xlu0 %876, %v433_v52  }
 0x382   :  { %721 = vmatmul.mubr.msk.f32.vlgmr.msra.gmra.mrb[0].mxu1 %vm153_vm2, %v169_v31  ;;  %v483_v31 = vld [vmem:[#allocation7 + $0x110] sm:$0xff] }
 0x383   :  { %v827_v34 = vpack.c.bf16 %v484_v33, %v483_v31 }
 0x385   :  { %828 = vmatpush3.bf16.msra.mxu0 %v827_v34 }
 0x386   :  { %829 = vmatprep.subr.bf16.mxu0 %v996_v9 }
 0x3f6   :  { %v439_v6 = vpop.permute.xlu0 %438 }
 0x3f7   :  { %v441_v10 = vmul.f32 %v439_v6, %v435_v7  ;;  %v479_v6 = vld [vmem:[#allocation7 + $0x90] sm:$0xff] }
 0x3f8   :  { %v480_v7 = vld [vmem:[#allocation7 + $0xb0] sm:$0xff] }
 0x3f9   :  { %v442_v14 = vadd.f32 %v441_v10, %v434_v12  ;;  %v481_v10 = vld [vmem:[#allocation7 + $0xd0] sm:$0xff] }
 0x3fa   :  { %v482_v12 = vld [vmem:[#allocation7 + $0xf0] sm:$0xff] }
 0x3fb   :  { %v446_v8 = vpop.permute.xlu0 %445 }
 0x3fc   :  { %v448_v15 = vmul.f32 %v446_v8, %v443_v13  ;;  %v845_v8 = vpack.c.bf16 %v480_v7, %v479_v6  ;;  %v848_v13 = vpack.c.bf16 %v482_v12, %v481_v10 }
 0x3fe   :  { %v449_v18 = vadd.f32 %v448_v15, %v442_v14 }
 0x400   :  { %v453_v17 = vpop.permute.xlu0 %452 }
 0x401   :  { %v455_v19 = vmul.f32 %v453_v17, %v450_v16  ;;  %v639_v17 = vld [vmem:[#allocation5 + $0x13] ss:$0 sm:$0xff] }
 0x403   :  { %v456_v20 = vadd.f32 %v455_v19, %v449_v18 }
 0x405   :  { %v457_v21 = vmax.f32 %v456_v20, 0.0 }
 0x407   :  { %v460_v22 = vsel %vm153_vm2, %v457_v21, 0.0 }
 0x455   :  { %v353_v39 = vpop.f32.mrb[0].mxu1 }
 0x456   :  { %v371_v40 = vadd.f32 %v364_v36, %v353_v39  ;;  %v355_v41 = vpop.f32.mrb[1].mxu1  ;;  %v486_v36 = vld [vmem:[#allocation7 + $0x170] sm:$0xff] }
 0x457   :  { %v372_v42 = vadd.f32 %v368_v38, %v355_v41  ;;  %v830_v37 = vpack.c.bf16 %v486_v36, %v485_v35  ;;  %v487_v38 = vld [vmem:[#allocation7 + $0x190] sm:$0xff] }
 0x458   :  { %v722_v43 = vmul.f32 -1.442695, %v371_v40  ;;  %v488_v39 = vld [vmem:[#allocation7 + $0x1b0] sm:$0xff] }
 0x459   :  { %380 = vrot.lane.b32.xlu1 %v372_v42, %s1001_s23  ;;  %831 = vmatpush3.bf16.msra.mxu0 %v830_v37  ;;  %v833_v40 = vpack.c.bf16 %v488_v39, %v487_v38  ;;  %v489_v41 = vld [vmem:[#allocation7 + $0x1d0] sm:$0xff] }
 0x45a   :  { %881 = vpow2.f32 %v722_v43  ;;  %832 = vmatprep.subr.bf16.mxu0 %v996_v9 }
 0x45d   :  { %834 = vmatpush3.bf16.msra.mxu0 %v833_v40 }
 0x45e   :  { %835 = vmatprep.subr.bf16.mxu0 %v996_v9 }
 0x464   :  { %v882_v44 = vpop.eup %881 }
 0x465   :  { %v376_v45 = vadd.f32 1.0, %v882_v44 }
 0x467   :  { %883 = vrcp.f32 %v376_v45 }
 0x471   :  { %v884_v46 = vpop.eup %883 }
 0x472   :  { %v386_v55 = vsub.f32 1.0, %v884_v46 }
 0x4cb   :  { %v381_v47 = vpop.permute.xlu1 %380 }
 0x4cc   :  { %v383_v48 = vmul.f32 %v884_v46, %v381_v47 }
 0x4ce   :  { %v384_v49 = vadd.f32 %v383_v48, %v372_v42  ;;  %v490_v42 = vld [vmem:[#allocation7 + $0x1f0] sm:$0xff] }
 0x4cf   :  { %v836_v43 = vpack.c.bf16 %v490_v42, %v489_v41 }
 0x4d0   :  { %885 = vtanh.f32 %v384_v49 }
 0x4d1   :  { %837 = vmatpush3.bf16.msra.mxu0 %v836_v43 }
 0x4d2   :  { %838 = vmatprep.subr.bf16.mxu0 %v996_v9 }
 0x4da   :  { %v886_v50 = vpop.eup %885 }
 0x4db   :  { %388 = vrot.lane.b32.xlu1 %v886_v50, %s1001_s23 }
 0x4df   :  { %392 = vrot.lane.b32.xlu1 %v1084_v61, %s1003_s25 }
 0x54d   :  { %v389_v54 = vpop.permute.xlu1 %388 }
 0x54e   :  { %v391_v58 = vmul.f32 %v389_v54, %v386_v55 }
 0x551   :  { %v393_v56 = vpop.permute.xlu1 %392 }
 0x552   :  { %v395_v59 = vmul.f32 %v884_v46, %v393_v56 }
 0x554   :  { %v396_v60 = vadd.f32 %v395_v59, %v391_v58  ;;  %v475_v59 = vld [vmem:[#allocation7 + $0x10] sm:$0xff] }
 0x556   :  { %400 = vrot.lane.b32.xlu1 %v396_v60, %s1001_s23 }
 0x5c8   :  { %v1097_v61 = vpop.permute.xlu1 %400 }
 0x5c9   :  { %v403_v63 = vsel %vm153_vm2, %v1097_v61, 0.0 }
 0x5ca   :  { %404 = vadd.xlane.f32.xlu1 %v403_v63 }
 0x5db   :  { %421 = vrot.lane.b32.xlu1 %v397_v1, %s1001_s23 }
 0x657   :  { %v405_v2 = vpop.xlane.xlu1 %404 }
 0x658   :  { %v406_v3 = vmul.f32 0.015625, %v405_v2 }
 0x65a   :  { %v407_v4 = vsub.f32 %v396_v60, %v406_v3  ;;  %v476_v60 = vld [vmem:[#allocation7 + $0x30] sm:$0xff] }
 0x65b   :  { %v422_v44 = vpop.permute.xlu1 %421  ;;  %v839_v1 = vpack.c.bf16 %v476_v60, %v475_v59  ;;  %v477_v3 = vld [vmem:[#allocation7 + $0x50] sm:$0xff] }
 0x65c   :  { %v408_v5 = vmul.f32 %v407_v4, %v407_v4 }
 0x65e   :  { %410 = vrot.lane.b32.xlu0 %v408_v5, %s1001_s23 }
 0x67d   :  { %461 = vadd.xlane.f32.xlu0 %v460_v22 }
 0x6d0   :  { %v411_v23 = vpop.permute.xlu0 %410 }
 0x6d1   :  { %v413_v24 = vsel %vm153_vm2, %v411_v23, 0.0 }
 0x6d2   :  { %414 = vadd.xlane.f32.xlu1 %v413_v24 }
 0x6e3   :  { %426 = vrot.lane.b32.xlu1 %v398_v25, %s1001_s23 }
 0x70a   :  { %v462_v26 = vpop.xlane.xlu0 %461 }
 0x70b   :  { %v463_v27 = vmul.f32 0.015625, %v462_v26 }
 0x70d   :  { %v464_v28 = vsub.f32 %v457_v21, %v463_v27  ;;  %v652_v21 = vand.u32 127, %v361_v32 }
 0x70f   :  { %v465_v29 = vmul.f32 %v464_v28, %v464_v28 }
 0x711   :  { %v466_v30 = vsel %vm153_vm2, %v465_v29, 0.0 }
 0x712   :  { %467 = vadd.xlane.f32.xlu0 %v466_v30 }
 0x75f   :  { %v415_v45 = vpop.xlane.xlu1 %414 }
 0x760   :  { %v416_v46 = vmul.f32 0.015625, %v415_v45 }
 0x762   :  { %v417_v47 = vadd.f32 1e-05, %v416_v46 }
 0x763   :  { %v427_v50 = vpop.permute.xlu1 %426 }
 0x764   :  { %887 = vrsqrt.f32 %v417_v47 }
 0x76e   :  { %v888_v48 = vpop.eup %887 }
 0x76f   :  { %v419_v49 = vmul.f32 %v888_v48, %v407_v4  ;;  %v478_v4 = vld [vmem:[#allocation7 + $0x70] sm:$0xff] }
 0x770   :  { %v842_v5 = vpack.c.bf16 %v478_v4, %v477_v3 }
 0x771   :  { %v424_v51 = vmul.f32 %v422_v44, %v419_v49 }
 0x773   :  { %v429_v52 = vadd.f32 %v427_v50, %v424_v51 }
 0x775   :  { %565 = vrot.lane.b32.xlu1 %v429_v52, %s1001_s23 }
 0x79f   :  { %v468_v53 = vpop.xlane.xlu0 %467 }
 0x7a0   :  { %v469_v54 = vmul.f32 0.015625, %v468_v53 }
 0x7a2   :  { %v470_v55 = vadd.f32 1e-05, %v469_v54 }
 0x7a4   :  { %889 = vrsqrt.f32 %v470_v55 }
 0x7ae   :  { %v890_v56 = vpop.eup %889 }
 0x7af   :  { %v472_v58 = vmul.f32 %v890_v56, %v464_v28 }
 0x7b1   :  { %v473_v63 = vmul.f32 %v472_v58, %v458_v57 }
 0x7b3   :  { %v474_v2 = vadd.f32 %v473_v63, %v459_v62 }
 0x7b5   :  { %770 = vmatmul.mubr.msk.f32.vlgmr.msra.gmra.mrb[2].mxu0 %vm153_vm2, %v474_v2 }
 0x7b6   :  { %840 = vmatpush3.bf16.msra.mxu0 %v839_v1  ;;  %788 = vmatprep.mubr.msk.f32.mxu0 %vm997_vm1, %v998_v11 }
 0x7b7   :  { %841 = vmatprep.subr.bf16.mxu0 %v996_v9 }
 0x7ba   :  { %843 = vmatpush3.bf16.msra.mxu0 %v842_v5 }
 0x7bb   :  { %844 = vmatprep.subr.bf16.mxu0 %v996_v9 }
 0x7be   :  { %846 = vmatpush3.bf16.msra.mxu0 %v845_v8 }
 0x7bf   :  { %847 = vmatprep.subr.bf16.mxu0 %v996_v9 }
 0x7c2   :  { %849 = vmatpush3.bf16.msra.mxu0 %v848_v13 }
 0x7e7   :  { %v566_v14 = vpop.permute.xlu1 %565 }
 0x7e8   :  { %789 = vmatmul.mubr.msk.f32.vlgmr.msra.gmra.mrb[4].mxu0 %vm153_vm2, %v566_v14 }
 0x888   :  { %v560_v15 = vpop.f32.mrb[2].mxu0 }
 0x889   :  { %v771_v11 = vpop.f32.mrb[3].mxu0 }
 0x8bb   :  { %v635_v16 = vpop.f32.mrb[4].mxu0 }
 0x8bc   :  { %v636_v18 = vadd.f32 %v635_v16, %v560_v15  ;;  %v790_v19 = vpop.f32.mrb[5].mxu0 }
 0x8be   :  { %v640_v20 = vadd.f32 %v639_v17, %v636_v18 }
 0x8c0   :  { %643 = vrot.lane.b32.xlu0 %v640_v20, %s1007_s26 }
 0x8c4   :  { %654 = vrot.lane.b32.xlu0 %v652_v21, %s1007_s26 }
 0x932   :  { %v644_v9 = vpop.permute.xlu0 %643 }
 0x933   :  { %v646_v22 = vsel %vm641_vm3, -1e+10, %v644_v9 }
 0x934   :  { %v648_v23 = vsel %vm647_vm4, %v646_v22, -inf }
 0x935   :  { %649 = vmax.xlane.f32.xlu1 %v648_v23 }
 0x936   :  { %v655_v28 = vpop.permute.xlu0 %654 }
 0x9c2   :  { %v650_v24 = vpop.xlane.xlu1 %649 }
 0x9c3   :  { %v672_v25 = vsub.f32 %v646_v22, %v650_v24  ;;  %vm653_vm5 = vcmp.eq.f32.partialorder %v646_v22, %v650_v24 }
 0x9c4   :  { %v656_v29 = vsel %vm653_vm5, %v655_v28, 8 }
 0x9c5   :  { %v673_v26 = vmul.f32 1.442695, %v672_v25  ;;  %v657_v30 = vsel %vm647_vm4, %v656_v29, 2147483647 }
 0x9c6   :  { %v659_v32 = vshra.s32 %v657_v30, 16  ;;  %v658_v34 = vand.u32 65535, %v657_v30 }
 0x9c7   :  { %891 = vpow2.f32 %v673_v26 }
 0x9c8   :  { %v661_v31 = vcvt.s32.f32 %v659_v32  ;;  %v660_v36 = vcvt.s32.f32 %v658_v34 }
 0x9d1   :  { %v892_v27 = vpop.eup %891 }
 0x9d2   :  { %676 = vrot.lane.b32.xlu0 %v892_v27, %s1008_s27 }
 0x9f1   :  { %662 = vmin.xlane.f32.xlu0 %v661_v31 }
 0xa44   :  { %v677_v0 = vpop.permute.xlu0 %676 }
 0xa45   :  { %v680_v33 = vsel %vm679_vm6, %v677_v0, 0.0 }
 0xa46   :  { %681 = vadd.xlane.f32.xlu1 %v680_v33 }
 0xa7e   :  { %v663_v35 = vpop.xlane.xlu0 %662 }
 0xa7f   :  { %vm664_vm7 = vcmp.eq.f32.partialorder %v661_v31, %v663_v35  ;;  %v669_v44 = vcvt.f32.s32 %v663_v35 }
 0xa80   :  { %v665_v37 = vsel %vm664_vm7, %v660_v36, inf }
 0xa81   :  { %666 = vmin.xlane.f32.xlu1 %v665_v37  ;;  %v670_v46 = vshll.u32 %v669_v44, 16 }
 0xad3   :  { %v682_v38 = vpop.xlane.xlu1 %681 }
 0xad4   :  { %893 = vlog2.f32 %v682_v38 }
 0xade   :  { %v894_v39 = vpop.eup %893 }
 0xadf   :  { %v684_v40 = vmul.f32 0.6931472, %v894_v39 }
 0xae1   :  { %v685_v41 = vadd.f32 %v684_v40, %v650_v24 }
 0xae3   :  { %v687_v42 = vsub.f32 %v646_v22, %v685_v41 }
 0xae5   :  { %689 = vrot.lane.b32.xlu1 %v687_v42, %s1008_s27 }
 0xb0e   :  { %v667_v43 = vpop.xlane.xlu1 %666 }
 0xb0f   :  { %v668_v45 = vcvt.f32.s32 %v667_v43 }
 0xb11   :  { %v671_v47 = vadd.s32 %v670_v46, %v668_v45 }
 0xb13   :  { %vm686_vm8 = vcmp.eq.s32.totalorder %v652_v21, %v671_v47  ;;  %v696_v51 = vcvt.s32.f32 %v671_v47 }
 0xb15   :  { %v697_v52 = vsel %vm153_vm2, %v1097_v61, %v696_v51 }
 0xb57   :  { %v690_v48 = vpop.permute.xlu1 %689 }
 0xb58   :  { %v692_v49 = vsel %vm686_vm8, %v690_v48, 0.0 }
 0xb59   :  { %v693_v50 = vsel %vm679_vm6, %v692_v49, 0.0 }
 0xb5a   :  { %694 = vadd.xlane.f32.xlu0 %v693_v50 }
 0xbe7   :  { %v695_v53 = vpop.xlane.xlu0 %694 }
 0xbe8   :  { %v699_v54 = vsel %vm698_vm9, %v697_v52, %v695_v53 }
 0xbe9   :  { %v701_v55 = vsel %vm700_vm10, %v699_v54, 0.0 }
 0xbea   :  { %702 = vst [vmem:[#allocation8] sm:$0xff] %v701_v55 }
 0xbeb   :  { %972 = shalt.err (!%p969_p0)
}
 0xbec   :  { %s973_s6 = scalar_lea.hbm %s1140_s3, 128 }
 0xbed   :  { %p974_p1 = scmp.ne.s32.totalorder %s1140_s3, %s973_s6  ;;  %p977_p2 = scmp.lt.u32.totalorder %s973_s6, %s1140_s3 }
 0xbef   :  { %p979_p3 = pnand %p977_p2, %p974_p1 }
 0xbf1   :  { %982 = shalt.err (!%p979_p3)
}
 0xbf2   :  { %712 = dma.vmem_to_hbm [thread:$0]  %s710_s29, 128, %s1140_s3, [#allocation4]  }
 0xbf3   :  { %987 = dma.done.wait [#allocation4], 128  }
 0xbf4   :  { %988 = vsyncadd [#allocation4], 4294967168 }
 0xbf5   :  { %716 = vsyncpa [#allocation3], 1 }
 0xbf6   :  { %717 = vsyncpa [#allocation6], 1 }
 0xbf7   :  { %718 = vsyncpa [#allocation4], 1 }

</bundles_post_ra>
